<compile_context>
chip_gen: v7x
topology: tpu7x:2x2x1
jax: 0.10.0
libtpu: 0.0.40
codegen_flags: <defaults>
</compile_context>

<pallas_src>
import functools

import jax
import jax.numpy as jnp
from jax import lax
from jax.experimental import pallas as pl
from jax.experimental.pallas import tpu as pltpu


def _round_up(x, m):
    return ((x + m - 1) // m) * m


@functools.lru_cache(maxsize=1)
def _vmem_capacity_bytes():
    try:
        return int(pltpu.get_tpu_info().vmem_capacity_bytes)
    except Exception:
        return 64 << 20          # conservative fallback (v7x per-core VMEM)


def _pick_batch_block(Bp, T, E, H, use_noise, vmem_limit, want_two):
    """Largest batch block (multiple of 8, dividing Bp) whose VMEM footprint
    (double-buffered inputs/outputs/weights + shared bf16 gate scratch) fits."""
    H4 = 4 * H
    pad_l = lambda x: _round_up(x, 128)
    pad_s = lambda x: _round_up(x, 8)
    Ep, Hp, H4p = pad_l(E), pad_l(H), pad_l(H4)

    def cost(bb):
        bbs = pad_s(bb)
        c = 2 * (bbs * 128 * 4                    # lengths column (bb,1) i32
                 + 2 * T * bbs * Ep * 2)          # enc/dec embeddings bf16
        if use_noise:
            c += 2 * bbs * Hp * 4
        c += 2 * (2 * pad_s(E) * H4p * 2          # enc_wih, dec_wih_e  bf16
                  + 3 * pad_s(H) * H4p * 2        # enc_whh, dec_whh, dec_wih_h
                  + 2 * 8 * H4p * 4)              # biases f32
        c += 2 * (bbs * Hp * 4 + T * bbs * Hp * 2)  # hidden f32, dec_h bf16 outs
        c += T * bbs * H4p * 2                    # shared bf16 gate scratch
        return c

    budget = int(vmem_limit * 0.9)
    cands = sorted((bb for bb in range(8, Bp + 1, 8) if Bp % bb == 0),
                   reverse=True)
    prefer = Bp // 2 if (want_two and Bp >= 16) else Bp
    for bb in cands:
        if bb <= prefer and cost(bb) <= budget:
            return bb
    return cands[-1]


def _pick_proj_tiles(M, H, Vp, vmem_limit):
    tn = 512 if Vp % 512 == 0 else (256 if Vp % 256 == 0 else 128)
    Hp = _round_up(H, 128)
    Hs = _round_up(H, 16)

    def cost(tm):
        return (2 * tm * Hp * 2        # x tile bf16 (double buffered)
                + 2 * tm * tn * 4      # output tile f32
                + 2 * Hs * tn * 2      # weight tile bf16
                + 2 * 8 * tn * 4)      # bias tile

    budget = int(vmem_limit * 0.85)
    for cand in range(max(8, min(M, 2048)), 7, -8):
        if M % cand == 0 and cost(cand) <= budget:
            return cand, tn
    return 8, tn


# ----------------------------------------------------------------------------
# Kernel A: encoder + decoder recurrence (input projections hoisted)
# ----------------------------------------------------------------------------
def _recurrence_body(
    tmax_ref,       # SMEM (nblocks,) int32  per-block max length (scalar prefetch)
    lens_ref,       # (Bb, 1) int32
    enc_emb_ref,    # (T, Bb, E)  bf16
    dec_emb_ref,    # (T, Bb, E)  bf16
    noise_ref,      # (Bb, H) f32 or None
    enc_wih_ref,    # (E, 4H) bf16
    enc_whh_ref,    # (H, 4H) bf16
    enc_b_ref,      # (1, 4H) f32   b_ih + b_hh
    dec_wih_e_ref,  # (E, 4H) bf16  decoder W_ih, embedding part
    dec_wih_h_ref,  # (H, 4H) bf16  decoder W_ih, hidden-code part
    dec_whh_ref,    # (H, 4H) bf16
    dec_b_ref,      # (1, 4H) f32
    hidden_ref,     # out: (Bb, H) f32
    dec_h_ref,      # out: (T, Bb, H) bf16   masked decoder hidden states
    g_ref,          # scratch: (T, Bb, 4H) bf16  (shared: encoder, then decoder)
):
    T, Bb, E = enc_emb_ref.shape
    H = enc_whh_ref.shape[0]
    H4 = 4 * H
    bf16 = jnp.bfloat16

    tmax = tmax_ref[pl.program_id(0)]          # dynamic loop bound for this block
    len_col = lens_ref[...]                    # (Bb, 1) int32

    # ---- hoisted encoder input projection (bf16 MXU, f32 accumulate) --------
    enc_x = enc_emb_ref[...].reshape(T * Bb, E)
    g_ref[...] = (
        jnp.dot(enc_x, enc_wih_ref[...], preferred_element_type=jnp.float32)
        + enc_b_ref[...]
    ).reshape(T, Bb, H4).astype(g_ref.dtype)

    def cell(pre_gates, h, c, whh_ref):
        # PyTorch gate order: i, f, g, o
        gates = pre_gates.astype(jnp.float32) + jnp.dot(
            h.astype(bf16), whh_ref[...], preferred_element_type=jnp.float32)
        i = jax.nn.sigmoid(gates[:, 0 * H:1 * H])
        f = jax.nn.sigmoid(gates[:, 1 * H:2 * H])
        g = jnp.tanh(gates[:, 2 * H:3 * H])
        o = jax.nn.sigmoid(gates[:, 3 * H:4 * H])
        c_new = f * c + i * g
        h_new = o * jnp.tanh(c_new)
        return h_new, c_new

    h0 = jnp.zeros((Bb, H), jnp.float32)
    c0 = jnp.zeros((Bb, H), jnp.float32)

    # -------------------- encoder (packed -> masked state update) ------------
    def enc_body(t, carry):
        h, c = carry
        h_new, c_new = cell(g_ref[t], h, c, enc_whh_ref)
        valid = t < len_col                                    # (Bb, 1) bool
        return (jnp.where(valid, h_new, h), jnp.where(valid, c_new, c))

    h_enc, _ = lax.fori_loop(0, tmax, enc_body, (h0, c0))

    # hidden = h / ||h||_2  (rsqrt on the EUP; eps guards zero-length rows)
    sumsq = jnp.sum(h_enc * h_enc, axis=1, keepdims=True)
    hidden = h_enc * lax.rsqrt(jnp.maximum(sumsq, 1e-12))
    if noise_ref is not None:
        hidden = hidden + noise_ref[...]
    hidden_ref[...] = hidden

    # hidden-code contribution + decoder bias, folded once into the gate scratch
    gates_code = (
        jnp.dot(hidden.astype(bf16), dec_wih_h_ref[...],
                preferred_element_type=jnp.float32)
        + dec_b_ref[...]
    )

    dec_x = dec_emb_ref[...].reshape(T * Bb, E)
    g_ref[...] = (
        jnp.dot(dec_x, dec_wih_e_ref[...], preferred_element_type=jnp.float32)
        .reshape(T, Bb, H4)
        + gates_code[None, :, :]
    ).astype(g_ref.dtype)

    # zero the whole output once; the loop only writes t < tmax
    dec_h_ref[...] = jnp.zeros(dec_h_ref.shape, dec_h_ref.dtype)

    # -------------------- decoder --------------------------------------------
    def dec_body(t, carry):
        h, c = carry
        h_new, c_new = cell(g_ref[t], h, c, dec_whh_ref)
        valid = t < len_col
        dec_h_ref[t] = jnp.where(valid, h_new, 0.0).astype(dec_h_ref.dtype)
        return (h_new, c_new)

    lax.fori_loop(0, tmax, dec_body, (h0, c0))


def recurrence_kernel_noise(tmax_ref, lens_ref, enc_emb_ref, dec_emb_ref,
                            noise_ref, *rest):
    _recurrence_body(tmax_ref, lens_ref, enc_emb_ref, dec_emb_ref, noise_ref, *rest)


def recurrence_kernel_nonoise(tmax_ref, lens_ref, enc_emb_ref, dec_emb_ref, *rest):
    _recurrence_body(tmax_ref, lens_ref, enc_emb_ref, dec_emb_ref, None, *rest)


# ----------------------------------------------------------------------------
# Kernel B: vocab projection, gridded vocab-outer / rows-inner
# ----------------------------------------------------------------------------
def projection_kernel(x_ref, w_ref, b_ref, o_ref):
    o_ref[...] = (
        jnp.dot(x_ref[...], w_ref[...], preferred_element_type=jnp.float32)
        + b_ref[...]
    )


# ----------------------------------------------------------------------------
# Parameter construction (matches nn.Module __init__ shapes / init)
# ----------------------------------------------------------------------------
def init_params(key, ntokens, emsize, nhidden):
    initrange = 0.1
    ks = jax.random.split(key, 10)
    u = lambda k, shape: jax.random.uniform(
        k, shape, jnp.float32, -initrange, initrange
    )
    H4 = 4 * nhidden
    return dict(
        embedding=u(ks[0], (ntokens, emsize)),
        embedding_decoder=u(ks[1], (ntokens, emsize)),
        enc_w_ih=u(ks[2], (H4, emsize)),
        enc_w_hh=u(ks[3], (H4, nhidden)),
        enc_b_ih=u(ks[4], (H4,)),
        enc_b_hh=u(ks[5], (H4,)),
        dec_w_ih=u(ks[6], (H4, emsize + nhidden)),
        dec_w_hh=u(ks[7], (H4, nhidden)),
        dec_b_ih=u(ks[8], (H4,)),
        dec_b_hh=u(ks[9], (H4,)),
        lin_w=u(jax.random.fold_in(key, 123), (ntokens, nhidden)),
        lin_b=jnp.zeros((ntokens,), jnp.float32),
    )


def prepare_params(params):
    """One-time (outside jit) layout prep: transpose, pad vocab dim, cast to bf16."""
    E = params["embedding"].shape[1]
    H = params["enc_w_hh"].shape[1]
    V = params["lin_w"].shape[0]
    Vp = _round_up(max(V, 128), 512)
    bf = jnp.bfloat16
    return dict(
        emb_enc=params["embedding"].astype(bf),
        emb_dec=params["embedding_decoder"].astype(bf),
        enc_wih_t=params["enc_w_ih"].T.astype(bf),                      # (E,4H)
        enc_whh_t=params["enc_w_hh"].T.astype(bf),                      # (H,4H)
        enc_b=(params["enc_b_ih"] + params["enc_b_hh"]).reshape(1, -1)
              .astype(jnp.float32),
        dec_wih_e_t=params["dec_w_ih"][:, :E].T.astype(bf),             # (E,4H)
        dec_wih_h_t=params["dec_w_ih"][:, E:].T.astype(bf),             # (H,4H)
        dec_whh_t=params["dec_w_hh"].T.astype(bf),                      # (H,4H)
        dec_b=(params["dec_b_ih"] + params["dec_b_hh"]).reshape(1, -1)
              .astype(jnp.float32),
        lin_w_t=jnp.pad(params["lin_w"].T, ((0, 0), (0, Vp - V))).astype(bf),
        lin_b=jnp.pad(params["lin_b"], (0, Vp - V)).reshape(1, Vp)
              .astype(jnp.float32),
    )


# ----------------------------------------------------------------------------
# Wrapper == Seq2Seq.forward(indices, lengths, noise)
# ----------------------------------------------------------------------------
@functools.partial(jax.jit, static_argnames=("ntokens", "noise", "noise_r"))
def seq2seq_forward(prep, indices, lengths, *, ntokens, noise=False,
                    noise_r=0.2, noise_key=None):
    B, T = indices.shape
    E = prep["enc_wih_t"].shape[0]
    H = prep["enc_whh_t"].shape[0]
    H4 = 4 * H
    V = ntokens
    Vp = prep["lin_w_t"].shape[1]

    vmem_total = _vmem_capacity_bytes()
    vmem_limit = min(100 << 20, int(vmem_total * 0.8))   # ~100 MiB v5e/v6e, ~51 MiB v7x
    want_two = vmem_total < (100 << 20)                  # v7x: 2 TCs -> 2 batch blocks

    use_noise = bool(noise) and noise_r > 0
    if use_noise and noise_key is None:
        raise ValueError("noise=True requires a noise_key")

    # time-major bf16 embedding gathers (gather glue stays in XLA)
    idx_tm = indices.T                                    # (T, B)
    enc_emb = prep["emb_enc"][idx_tm]                     # (T, B, E) bf16
    dec_emb = prep["emb_dec"][idx_tm]

    # pad batch to a sublane multiple; padded rows behave like length 0
    Bp = _round_up(max(B, 8), 8)
    if want_two and Bp > 8:
        Bp = _round_up(Bp, 16)
    pad_b = Bp - B
    lengths_i = lengths.astype(jnp.int32)
    if pad_b:
        enc_emb = jnp.pad(enc_emb, ((0, 0), (0, pad_b), (0, 0)))
        dec_emb = jnp.pad(dec_emb, ((0, 0), (0, pad_b), (0, 0)))
        lengths_i = jnp.pad(lengths_i, (0, pad_b))
    lens_col = lengths_i.reshape(Bp, 1)

    # ---------------- Kernel A: recurrences, gridded over batch blocks -------
    bb = _pick_batch_block(Bp, T, E, H, use_noise, vmem_limit, want_two)
    nblocks = Bp // bb
    block_tmax = jnp.minimum(
        jnp.max(lengths_i.reshape(nblocks, bb), axis=1), T).astype(jnp.int32)

    bmap = lambda i, tmx: (0, i, 0)
    rmap = lambda i, tmx: (i, 0)
    wmap = lambda i, tmx: (0, 0)

    inputs = [lens_col, enc_emb, dec_emb]
    in_specs = [
        pl.BlockSpec((bb, 1), rmap),
        pl.BlockSpec((T, bb, E), bmap),
        pl.BlockSpec((T, bb, E), bmap),
    ]
    if use_noise:
        gnoise = noise_r * jax.random.normal(noise_key, (B, H), jnp.float32)
        if pad_b:
            gnoise = jnp.pad(gnoise, ((0, pad_b), (0, 0)))
        inputs.append(gnoise)
        in_specs.append(pl.BlockSpec((bb, H), rmap))

    weight_names = ("enc_wih_t", "enc_whh_t", "enc_b",
                    "dec_wih_e_t", "dec_wih_h_t", "dec_whh_t", "dec_b")
    weights = [prep[k] for k in weight_names]
    inputs.extend(weights)
    in_specs.extend(pl.BlockSpec(w.shape, wmap) for w in weights)

    kernel = recurrence_kernel_noise if use_noise else recurrence_kernel_nonoise

    hidden_p, dec_h = pl.pallas_call(
        kernel,
        out_shape=(
            jax.ShapeDtypeStruct((Bp, H), jnp.float32),      # encoded hidden
            jax.ShapeDtypeStruct((T, Bp, H), jnp.bfloat16),  # decoder hiddens
        ),
        grid_spec=pltpu.PrefetchScalarGridSpec(
            num_scalar_prefetch=1,
            grid=(nblocks,),
            in_specs=in_specs,
            out_specs=(
                pl.BlockSpec((bb, H), rmap),
                pl.BlockSpec((T, bb, H), bmap),
            ),
            scratch_shapes=[pltpu.VMEM((T, bb, H4), jnp.bfloat16)],
        ),
        compiler_params=pltpu.CompilerParams(
            dimension_semantics=("parallel",),
            vmem_limit_bytes=vmem_limit,
        ),
    )(block_tmax, *inputs)

    # ---------------- Kernel B: (Bp*T, H) @ (H, Vp) + bias --------------------
    # Rows are batch-major so the final logits never need the big (B,T,V)
    # transpose; the transposed tensor here is only (Bp,T,H) bf16.
    M = Bp * T
    x = dec_h.transpose(1, 0, 2).reshape(M, H)
    tm, tn = _pick_proj_tiles(M, H, Vp, vmem_limit)

    decoded_flat = pl.pallas_call(
        projection_kernel,
        out_shape=jax.ShapeDtypeStruct((M, Vp), jnp.float32),
        grid=(Vp // tn, M // tm),           # vocab outer -> each W tile DMA'd once
        in_specs=[
            pl.BlockSpec((tm, H), lambda j, i: (i, 0)),
            pl.BlockSpec((H, tn), lambda j, i: (0, j)),
            pl.BlockSpec((1, tn), lambda j, i: (0, j)),
        ],
        out_specs=pl.BlockSpec((tm, tn), lambda j, i: (i, j)),
        compiler_params=pltpu.CompilerParams(
            dimension_semantics=("parallel", "parallel"),
            vmem_limit_bytes=vmem_limit,
        ),
    )(x, prep["lin_w_t"], prep["lin_b"])

    decoded = decoded_flat.reshape(Bp, T, Vp)[:B, :, :V]   # (B, T, V)
    hidden = hidden_p[:B]                                  # (B, H)
    return decoded, hidden


# ----------------------------------------------------------------------------
# Pure-JAX f32 reference (mirrors the PyTorch module semantics) for checking
# ----------------------------------------------------------------------------
def reference_forward(params, indices, lengths):
    B, T = indices.shape
    E = params["embedding"].shape[1]
    H = params["enc_w_hh"].shape[1]
    emb = params["embedding"][indices]              # (B, T, E)
    demb = params["embedding_decoder"][indices]
    lengths = lengths.astype(jnp.int32)

    def lstm_cell(x, h, c, w_ih, w_hh, b_ih, b_hh):
        gates = x @ w_ih.T + h @ w_hh.T + b_ih + b_hh
        i, f, g, o = jnp.split(gates, 4, axis=1)
        i, f, o = jax.nn.sigmoid(i), jax.nn.sigmoid(f), jax.nn.sigmoid(o)
        g = jnp.tanh(g)
        c_new = f * c + i * g
        return o * jnp.tanh(c_new), c_new

    h = c = jnp.zeros((B, H), jnp.float32)
    for t in range(T):
        h_new, c_new = lstm_cell(emb[:, t], h, c, params["enc_w_ih"],
                                 params["enc_w_hh"], params["enc_b_ih"],
                                 params["enc_b_hh"])
        m = (t < lengths)[:, None]
        h = jnp.where(m, h_new, h)
        c = jnp.where(m, c_new, c)
    hidden = h / jnp.linalg.norm(h, axis=1, keepdims=True)

    hd = cd = jnp.zeros((B, H), jnp.float32)
    outs = []
    for t in range(T):
        x = jnp.concatenate([demb[:, t], hidden], axis=1)
        hd, cd = lstm_cell(x, hd, cd, params["dec_w_ih"], params["dec_w_hh"],
                           params["dec_b_ih"], params["dec_b_hh"])
        m = (t < lengths)[:, None]
        outs.append(jnp.where(m, hd, 0.0))
    out = jnp.stack(outs, axis=1)                   # (B, T, H)
    decoded = out @ params["lin_w"].T + params["lin_b"]
    return decoded, hidden


# TODO(synk): store_grad_norm (backward hook) and generate()'s autoregressive
# multinomial sampling loop are training/inference-loop features outside
# forward() and are not translated.

if __name__ == "__main__":
    ntokens, emsize, nhidden = 50, 16, 32
    B, maxlen = 2, 8

    key = jax.random.PRNGKey(0)
    pkey, ikey = jax.random.split(key)
    params = init_params(pkey, ntokens, emsize, nhidden)
    prep = prepare_params(params)

    indices = jax.random.randint(ikey, (B, maxlen), 0, ntokens, jnp.int32)
    # pack_padded_sequence expects descending lengths; max length == maxlen
    lengths = jnp.array([maxlen, 5], dtype=jnp.int32)

    decoded, hidden = seq2seq_forward(prep, indices, lengths,
                                      ntokens=ntokens, noise=False)
    decoded = jax.block_until_ready(decoded)
    hidden = jax.block_until_ready(hidden)

    assert decoded.shape == (B, maxlen, ntokens)
    assert hidden.shape == (B, nhidden)
    assert bool(jnp.all(jnp.isfinite(decoded)))

    ref_dec, ref_hid = reference_forward(params, indices, lengths)
    err_d = float(jnp.max(jnp.abs(decoded - ref_dec)))
    err_h = float(jnp.max(jnp.abs(hidden - ref_hid)))
    assert err_d < 3e-2 and err_h < 3e-2, (err_d, err_h)

    print("KERNEL_OK")
</pallas_src>

<mosaic_0001>
module attributes {stable_mosaic.version = 11 : i64} {
  func.func @recurrence_kernel_nonoise(%arg0: i32, %arg1: memref<1xi32, #tpu.memory_space<smem>>, %arg2: memref<8x1xi32, #tpu.memory_space<vmem>>, %arg3: memref<8x8x16xbf16, #tpu.memory_space<vmem>>, %arg4: memref<8x8x16xbf16, #tpu.memory_space<vmem>>, %arg5: memref<16x128xbf16, #tpu.memory_space<vmem>>, %arg6: memref<32x128xbf16, #tpu.memory_space<vmem>>, %arg7: memref<1x128xf32, #tpu.memory_space<vmem>>, %arg8: memref<16x128xbf16, #tpu.memory_space<vmem>>, %arg9: memref<32x128xbf16, #tpu.memory_space<vmem>>, %arg10: memref<32x128xbf16, #tpu.memory_space<vmem>>, %arg11: memref<1x128xf32, #tpu.memory_space<vmem>>, %arg12: memref<8x32xf32, #tpu.memory_space<vmem>>, %arg13: memref<8x8x32xbf16, #tpu.memory_space<vmem>>, %arg14: memref<8x8x128xbf16, #tpu.memory_space<vmem>>) attributes {dimension_semantics = [#tpu.dimension_semantics<parallel>], iteration_bounds = array<i64: 1>, scalar_prefetch = 1 : i64, scratch_operands = 1 : i64, tpu.core_type = #tpu.core_type<tc>, window_params = [{transform_indices = @transform_0, window_bounds = array<i64: 8, 1>}, {transform_indices = @transform_1, window_bounds = array<i64: 8, 8, 16>}, {transform_indices = @transform_2, window_bounds = array<i64: 8, 8, 16>}, {pipeline_mode = #tpu.pipeline_mode<synchronous>, transform_indices = @transform_3, window_bounds = array<i64: 16, 128>}, {pipeline_mode = #tpu.pipeline_mode<synchronous>, transform_indices = @transform_4, window_bounds = array<i64: 32, 128>}, {pipeline_mode = #tpu.pipeline_mode<synchronous>, transform_indices = @transform_5, window_bounds = array<i64: 1, 128>}, {pipeline_mode = #tpu.pipeline_mode<synchronous>, transform_indices = @transform_6, window_bounds = array<i64: 16, 128>}, {pipeline_mode = #tpu.pipeline_mode<synchronous>, transform_indices = @transform_7, window_bounds = array<i64: 32, 128>}, {pipeline_mode = #tpu.pipeline_mode<synchronous>, transform_indices = @transform_8, window_bounds = array<i64: 32, 128>}, {pipeline_mode = #tpu.pipeline_mode<synchronous>, transform_indices = @transform_9, window_bounds = array<i64: 1, 128>}, {transform_indices = @transform_10, window_bounds = array<i64: 8, 32>}, {transform_indices = @transform_11, window_bounds = array<i64: 8, 8, 32>}]} {
    %0 = arith.index_cast %arg0 : i32 to index
    %1 = memref.load %arg1[%0] : memref<1xi32, #tpu.memory_space<smem>>
    %c0 = arith.constant 0 : index
    %c0_0 = arith.constant 0 : index
    %2 = vector.load %arg2[%c0, %c0_0] : memref<8x1xi32, #tpu.memory_space<vmem>>, vector<8x1xi32>
    %c0_1 = arith.constant 0 : index
    %c0_2 = arith.constant 0 : index
    %c0_3 = arith.constant 0 : index
    %3 = vector.load %arg3[%c0_1, %c0_2, %c0_3] : memref<8x8x16xbf16, #tpu.memory_space<vmem>>, vector<8x8x16xbf16>
    %4 = vector.shape_cast %3 : vector<8x8x16xbf16> to vector<64x16xbf16>
    %c0_4 = arith.constant 0 : index
    %c0_5 = arith.constant 0 : index
    %5 = vector.load %arg5[%c0_4, %c0_5] : memref<16x128xbf16, #tpu.memory_space<vmem>>, vector<16x128xbf16>
    %cst = arith.constant dense<0.000000e+00> : vector<64x128xf32>
    %6 = tpu.matmul %4, %5, %cst {dimension_numbers = #tpu.dot_dimension_numbers<[1], [0], [0], [1], [0, 0, 1, 1], [], []>} : vector<64x16xbf16>, vector<16x128xbf16>, vector<64x128xf32> -> vector<64x128xf32>
    %c0_6 = arith.constant 0 : index
    %c0_7 = arith.constant 0 : index
    %7 = vector.load %arg7[%c0_6, %c0_7] : memref<1x128xf32, #tpu.memory_space<vmem>>, vector<1x128xf32>
    %8 = vector.broadcast %7 : vector<1x128xf32> to vector<64x128xf32>
    %9 = arith.addf %6, %8 : vector<64x128xf32>
    %10 = vector.shape_cast %9 : vector<64x128xf32> to vector<8x8x128xf32>
    %11 = arith.truncf %10 : vector<8x8x128xf32> to vector<8x8x128xbf16>
    %c0_8 = arith.constant 0 : index
    %c0_9 = arith.constant 0 : index
    %c0_10 = arith.constant 0 : index
    %12 = vector.load %arg14[%c0_8, %c0_9, %c0_10] : memref<8x8x128xbf16, #tpu.memory_space<vmem>>, vector<8x8x128xbf16>
    tpu.vector_store %arg14[%c0_8, %c0_9, %c0_10], %11 {strides = array<i32>} : memref<8x8x128xbf16, #tpu.memory_space<vmem>>, vector<8x8x128xbf16>,
    %cst_11 = arith.constant 0.000000e+00 : f32
    %13 = vector.broadcast %cst_11 : f32 to vector<8x32xf32>
    %cst_12 = arith.constant 0.000000e+00 : f32
    %14 = vector.broadcast %cst_12 : f32 to vector<8x32xf32>
    %c0_i32 = arith.constant 0 : i32
    %15 = arith.subi %1, %c0_i32 : i32
    %16 = arith.addi %c0_i32, %15 : i32
    %c1_i32 = arith.constant 1 : i32
    %17:2 = scf.for %arg15 = %c0_i32 to %16 step %c1_i32 iter_args(%arg16 = %13, %arg17 = %14) -> (vector<8x32xf32>, vector<8x32xf32>)  : i32 {
      %48 = arith.index_cast %arg15 : i32 to index
      %c0_37 = arith.constant 0 : index
      %c0_38 = arith.constant 0 : index
      %49 = vector.load %arg14[%48, %c0_37, %c0_38] : memref<8x8x128xbf16, #tpu.memory_space<vmem>>, vector<1x8x128xbf16>
      %50 = vector.shape_cast %49 : vector<1x8x128xbf16> to vector<8x128xbf16>
      %51 = arith.extf %50 : vector<8x128xbf16> to vector<8x128xf32>
      %52 = arith.truncf %arg16 : vector<8x32xf32> to vector<8x32xbf16>
      %c0_39 = arith.constant 0 : index
      %c0_40 = arith.constant 0 : index
      %53 = vector.load %arg6[%c0_39, %c0_40] : memref<32x128xbf16, #tpu.memory_space<vmem>>, vector<32x128xbf16>
      %cst_41 = arith.constant dense<0.000000e+00> : vector<8x128xf32>
      %54 = tpu.matmul %52, %53, %cst_41 {dimension_numbers = #tpu.dot_dimension_numbers<[1], [0], [0], [1], [0, 0, 1, 1], [], []>} : vector<8x32xbf16>, vector<32x128xbf16>, vector<8x128xf32> -> vector<8x128xf32>
      %55 = arith.addf %51, %54 : vector<8x128xf32>
      %56 = vector.extract_strided_slice %55 {offsets = [0, 0], sizes = [8, 32], strides = [1, 1]} : vector<8x128xf32> to vector<8x32xf32>
      %57 = arith.negf %56 : vector<8x32xf32>
      %58 = math.exp %57 : vector<8x32xf32>
      %cst_42 = arith.constant 1.000000e+00 : f32
      %59 = vector.broadcast %cst_42 : f32 to vector<8x32xf32>
      %60 = arith.addf %59, %58 : vector<8x32xf32>
      %61 = arith.divf %59, %60 : vector<8x32xf32>
      %62 = vector.extract_strided_slice %55 {offsets = [0, 32], sizes = [8, 32], strides = [1, 1]} : vector<8x128xf32> to vector<8x32xf32>
      %63 = arith.negf %62 : vector<8x32xf32>
      %64 = math.exp %63 : vector<8x32xf32>
      %cst_43 = arith.constant 1.000000e+00 : f32
      %65 = vector.broadcast %cst_43 : f32 to vector<8x32xf32>
      %66 = arith.addf %65, %64 : vector<8x32xf32>
      %67 = arith.divf %65, %66 : vector<8x32xf32>
      %68 = vector.extract_strided_slice %55 {offsets = [0, 64], sizes = [8, 32], strides = [1, 1]} : vector<8x128xf32> to vector<8x32xf32>
      %69 = math.tanh %68 : vector<8x32xf32>
      %70 = vector.extract_strided_slice %55 {offsets = [0, 96], sizes = [8, 32], strides = [1, 1]} : vector<8x128xf32> to vector<8x32xf32>
      %71 = arith.negf %70 : vector<8x32xf32>
      %72 = math.exp %71 : vector<8x32xf32>
      %cst_44 = arith.constant 1.000000e+00 : f32
      %73 = vector.broadcast %cst_44 : f32 to vector<8x32xf32>
      %74 = arith.addf %73, %72 : vector<8x32xf32>
      %75 = arith.divf %73, %74 : vector<8x32xf32>
      %76 = arith.mulf %67, %arg17 : vector<8x32xf32>
      %77 = arith.mulf %61, %69 : vector<8x32xf32>
      %78 = arith.addf %76, %77 : vector<8x32xf32>
      %79 = math.tanh %78 : vector<8x32xf32>
      %80 = arith.mulf %75, %79 : vector<8x32xf32>
      %81 = vector.broadcast %arg15 : i32 to vector<8x1xi32>
      %82 = arith.cmpi slt, %81, %2 : vector<8x1xi32>
      %83 = vector.shape_cast %82 : vector<8x1xi1> to vector<8x1xi1>
      %84 = vector.broadcast %83 : vector<8x1xi1> to vector<8x32xi1>
      %85 = arith.select %84, %80, %arg16 : vector<8x32xi1>, vector<8x32xf32>
      %86 = vector.shape_cast %82 : vector<8x1xi1> to vector<8x1xi1>
      %87 = vector.broadcast %86 : vector<8x1xi1> to vector<8x32xi1>
      %88 = arith.select %87, %78, %arg17 : vector<8x32xi1>, vector<8x32xf32>
      scf.yield %85, %88 : vector<8x32xf32>, vector<8x32xf32>
    }
    %18 = arith.mulf %17#0, %17#0 : vector<8x32xf32>
    %cst_13 = arith.constant dense<0.000000e+00> : vector<8xf32>
    %19 = vector.multi_reduction <add>, %18, %cst_13 [1] : vector<8x32xf32> to vector<8xf32>
    %20 = vector.shape_cast %19 : vector<8xf32> to vector<8x1xf32>
    %cst_14 = arith.constant 9.99999996E-13 : f32
    %21 = vector.broadcast %cst_14 : f32 to vector<8x1xf32>
    %22 = arith.maximumf %20, %21 : vector<8x1xf32>
    %23 = math.rsqrt %22 : vector<8x1xf32>
    %24 = vector.broadcast %23 : vector<8x1xf32> to vector<8x32xf32>
    %25 = arith.mulf %17#0, %24 : vector<8x32xf32>
    %c0_15 = arith.constant 0 : index
    %c0_16 = arith.constant 0 : index
    %26 = vector.load %arg12[%c0_15, %c0_16] : memref<8x32xf32, #tpu.memory_space<vmem>>, vector<8x32xf32>
    tpu.vector_store %arg12[%c0_15, %c0_16], %25 {strides = array<i32>} : memref<8x32xf32, #tpu.memory_space<vmem>>, vector<8x32xf32>,
    %27 = arith.truncf %25 : vector<8x32xf32> to vector<8x32xbf16>
    %c0_17 = arith.constant 0 : index
    %c0_18 = arith.constant 0 : index
    %28 = vector.load %arg9[%c0_17, %c0_18] : memref<32x128xbf16, #tpu.memory_space<vmem>>, vector<32x128xbf16>
    %cst_19 = arith.constant dense<0.000000e+00> : vector<8x128xf32>
    %29 = tpu.matmul %27, %28, %cst_19 {dimension_numbers = #tpu.dot_dimension_numbers<[1], [0], [0], [1], [0, 0, 1, 1], [], []>} : vector<8x32xbf16>, vector<32x128xbf16>, vector<8x128xf32> -> vector<8x128xf32>
    %c0_20 = arith.constant 0 : index
    %c0_21 = arith.constant 0 : index
    %30 = vector.load %arg11[%c0_20, %c0_21] : memref<1x128xf32, #tpu.memory_space<vmem>>, vector<1x128xf32>
    %31 = vector.broadcast %30 : vector<1x128xf32> to vector<8x128xf32>
    %32 = arith.addf %29, %31 : vector<8x128xf32>
    %c0_22 = arith.constant 0 : index
    %c0_23 = arith.constant 0 : index
    %c0_24 = arith.constant 0 : index
    %33 = vector.load %arg4[%c0_22, %c0_23, %c0_24] : memref<8x8x16xbf16, #tpu.memory_space<vmem>>, vector<8x8x16xbf16>
    %34 = vector.shape_cast %33 : vector<8x8x16xbf16> to vector<64x16xbf16>
    %c0_25 = arith.constant 0 : index
    %c0_26 = arith.constant 0 : index
    %35 = vector.load %arg8[%c0_25, %c0_26] : memref<16x128xbf16, #tpu.memory_space<vmem>>, vector<16x128xbf16>
    %cst_27 = arith.constant dense<0.000000e+00> : vector<64x128xf32>
    %36 = tpu.matmul %34, %35, %cst_27 {dimension_numbers = #tpu.dot_dimension_numbers<[1], [0], [0], [1], [0, 0, 1, 1], [], []>} : vector<64x16xbf16>, vector<16x128xbf16>, vector<64x128xf32> -> vector<64x128xf32>
    %37 = vector.shape_cast %36 : vector<64x128xf32> to vector<8x8x128xf32>
    %38 = vector.shape_cast %32 : vector<8x128xf32> to vector<1x8x128xf32>
    %39 = vector.broadcast %38 : vector<1x8x128xf32> to vector<8x8x128xf32>
    %40 = arith.addf %37, %39 : vector<8x8x128xf32>
    %41 = arith.truncf %40 : vector<8x8x128xf32> to vector<8x8x128xbf16>
    %c0_28 = arith.constant 0 : index
    %c0_29 = arith.constant 0 : index
    %c0_30 = arith.constant 0 : index
    %42 = vector.load %arg14[%c0_28, %c0_29, %c0_30] : memref<8x8x128xbf16, #tpu.memory_space<vmem>>, vector<8x8x128xbf16>
    tpu.vector_store %arg14[%c0_28, %c0_29, %c0_30], %41 {strides = array<i32>} : memref<8x8x128xbf16, #tpu.memory_space<vmem>>, vector<8x8x128xbf16>,
    %cst_31 = arith.constant 0.000000e+00 : bf16
    %43 = vector.broadcast %cst_31 : bf16 to vector<8x8x32xbf16>
    %c0_32 = arith.constant 0 : index
    %c0_33 = arith.constant 0 : index
    %c0_34 = arith.constant 0 : index
    %44 = vector.load %arg13[%c0_32, %c0_33, %c0_34] : memref<8x8x32xbf16, #tpu.memory_space<vmem>>, vector<8x8x32xbf16>
    tpu.vector_store %arg13[%c0_32, %c0_33, %c0_34], %43 {strides = array<i32>} : memref<8x8x32xbf16, #tpu.memory_space<vmem>>, vector<8x8x32xbf16>,
    %c0_i32_35 = arith.constant 0 : i32
    %45 = arith.subi %1, %c0_i32_35 : i32
    %46 = arith.addi %c0_i32_35, %45 : i32
    %c1_i32_36 = arith.constant 1 : i32
    %47:2 = scf.for %arg15 = %c0_i32_35 to %46 step %c1_i32_36 iter_args(%arg16 = %13, %arg17 = %14) -> (vector<8x32xf32>, vector<8x32xf32>)  : i32 {
      %48 = arith.index_cast %arg15 : i32 to index
      %c0_37 = arith.constant 0 : index
      %c0_38 = arith.constant 0 : index
      %49 = vector.load %arg14[%48, %c0_37, %c0_38] : memref<8x8x128xbf16, #tpu.memory_space<vmem>>, vector<1x8x128xbf16>
      %50 = vector.shape_cast %49 : vector<1x8x128xbf16> to vector<8x128xbf16>
      %51 = arith.extf %50 : vector<8x128xbf16> to vector<8x128xf32>
      %52 = arith.truncf %arg16 : vector<8x32xf32> to vector<8x32xbf16>
      %c0_39 = arith.constant 0 : index
      %c0_40 = arith.constant 0 : index
      %53 = vector.load %arg10[%c0_39, %c0_40] : memref<32x128xbf16, #tpu.memory_space<vmem>>, vector<32x128xbf16>
      %cst_41 = arith.constant dense<0.000000e+00> : vector<8x128xf32>
      %54 = tpu.matmul %52, %53, %cst_41 {dimension_numbers = #tpu.dot_dimension_numbers<[1], [0], [0], [1], [0, 0, 1, 1], [], []>} : vector<8x32xbf16>, vector<32x128xbf16>, vector<8x128xf32> -> vector<8x128xf32>
      %55 = arith.addf %51, %54 : vector<8x128xf32>
      %56 = vector.extract_strided_slice %55 {offsets = [0, 0], sizes = [8, 32], strides = [1, 1]} : vector<8x128xf32> to vector<8x32xf32>
      %57 = arith.negf %56 : vector<8x32xf32>
      %58 = math.exp %57 : vector<8x32xf32>
      %cst_42 = arith.constant 1.000000e+00 : f32
      %59 = vector.broadcast %cst_42 : f32 to vector<8x32xf32>
      %60 = arith.addf %59, %58 : vector<8x32xf32>
      %61 = arith.divf %59, %60 : vector<8x32xf32>
      %62 = vector.extract_strided_slice %55 {offsets = [0, 32], sizes = [8, 32], strides = [1, 1]} : vector<8x128xf32> to vector<8x32xf32>
      %63 = arith.negf %62 : vector<8x32xf32>
      %64 = math.exp %63 : vector<8x32xf32>
      %cst_43 = arith.constant 1.000000e+00 : f32
      %65 = vector.broadcast %cst_43 : f32 to vector<8x32xf32>
      %66 = arith.addf %65, %64 : vector<8x32xf32>
      %67 = arith.divf %65, %66 : vector<8x32xf32>
      %68 = vector.extract_strided_slice %55 {offsets = [0, 64], sizes = [8, 32], strides = [1, 1]} : vector<8x128xf32> to vector<8x32xf32>
      %69 = math.tanh %68 : vector<8x32xf32>
      %70 = vector.extract_strided_slice %55 {offsets = [0, 96], sizes = [8, 32], strides = [1, 1]} : vector<8x128xf32> to vector<8x32xf32>
      %71 = arith.negf %70 : vector<8x32xf32>
      %72 = math.exp %71 : vector<8x32xf32>
      %cst_44 = arith.constant 1.000000e+00 : f32
      %73 = vector.broadcast %cst_44 : f32 to vector<8x32xf32>
      %74 = arith.addf %73, %72 : vector<8x32xf32>
      %75 = arith.divf %73, %74 : vector<8x32xf32>
      %76 = arith.mulf %67, %arg17 : vector<8x32xf32>
      %77 = arith.mulf %61, %69 : vector<8x32xf32>
      %78 = arith.addf %76, %77 : vector<8x32xf32>
      %79 = math.tanh %78 : vector<8x32xf32>
      %80 = arith.mulf %75, %79 : vector<8x32xf32>
      %81 = vector.broadcast %arg15 : i32 to vector<8x1xi32>
      %82 = arith.cmpi slt, %81, %2 : vector<8x1xi32>
      %cst_45 = arith.constant 0.000000e+00 : f32
      %83 = vector.shape_cast %82 : vector<8x1xi1> to vector<8x1xi1>
      %84 = vector.broadcast %83 : vector<8x1xi1> to vector<8x32xi1>
      %85 = vector.broadcast %cst_45 : f32 to vector<8x32xf32>
      %86 = arith.select %84, %80, %85 : vector<8x32xi1>, vector<8x32xf32>
      %87 = arith.truncf %86 : vector<8x32xf32> to vector<8x32xbf16>
      %88 = arith.index_cast %arg15 : i32 to index
      %c0_46 = arith.constant 0 : index
      %c0_47 = arith.constant 0 : index
      %89 = vector.load %arg13[%88, %c0_46, %c0_47] : memref<8x8x32xbf16, #tpu.memory_space<vmem>>, vector<1x8x32xbf16>
      %90 = vector.shape_cast %89 : vector<1x8x32xbf16> to vector<8x32xbf16>
      %91 = vector.shape_cast %87 : vector<8x32xbf16> to vector<1x8x32xbf16>
      tpu.vector_store %arg13[%88, %c0_46, %c0_47], %91 {strides = array<i32>} : memref<8x8x32xbf16, #tpu.memory_space<vmem>>, vector<1x8x32xbf16>,
      scf.yield %80, %78 : vector<8x32xf32>, vector<8x32xf32>
    }
    return
  }
  func.func @transform_0(%arg0: i32, %arg1: memref<1xi32, #tpu.memory_space<smem>>) -> (i32, i32) {
    %c0_i32 = arith.constant 0 : i32
    %c0_i32_0 = arith.constant 0 : i32
    return %arg0, %c0_i32 : i32, i32
  }
  func.func @transform_1(%arg0: i32, %arg1: memref<1xi32, #tpu.memory_space<smem>>) -> (i32, i32, i32) {
    %c0_i32 = arith.constant 0 : i32
    %c0_i32_0 = arith.constant 0 : i32
    %c0_i32_1 = arith.constant 0 : i32
    return %c0_i32, %arg0, %c0_i32_0 : i32, i32, i32
  }
  func.func @transform_2(%arg0: i32, %arg1: memref<1xi32, #tpu.memory_space<smem>>) -> (i32, i32, i32) {
    %c0_i32 = arith.constant 0 : i32
    %c0_i32_0 = arith.constant 0 : i32
    %c0_i32_1 = arith.constant 0 : i32
    return %c0_i32, %arg0, %c0_i32_0 : i32, i32, i32
  }
  func.func @transform_3(%arg0: i32, %arg1: memref<1xi32, #tpu.memory_space<smem>>) -> (i32, i32) {
    %c0_i32 = arith.constant 0 : i32
    %c0_i32_0 = arith.constant 0 : i32
    %c0_i32_1 = arith.constant 0 : i32
    return %c0_i32, %c0_i32_0 : i32, i32
  }
  func.func @transform_4(%arg0: i32, %arg1: memref<1xi32, #tpu.memory_space<smem>>) -> (i32, i32) {
    %c0_i32 = arith.constant 0 : i32
    %c0_i32_0 = arith.constant 0 : i32
    %c0_i32_1 = arith.constant 0 : i32
    return %c0_i32, %c0_i32_0 : i32, i32
  }
  func.func @transform_5(%arg0: i32, %arg1: memref<1xi32, #tpu.memory_space<smem>>) -> (i32, i32) {
    %c0_i32 = arith.constant 0 : i32
    %c0_i32_0 = arith.constant 0 : i32
    %c0_i32_1 = arith.constant 0 : i32
    return %c0_i32, %c0_i32_0 : i32, i32
  }
  func.func @transform_6(%arg0: i32, %arg1: memref<1xi32, #tpu.memory_space<smem>>) -> (i32, i32) {
    %c0_i32 = arith.constant 0 : i32
    %c0_i32_0 = arith.constant 0 : i32
    %c0_i32_1 = arith.constant 0 : i32
    return %c0_i32, %c0_i32_0 : i32, i32
  }
  func.func @transform_7(%arg0: i32, %arg1: memref<1xi32, #tpu.memory_space<smem>>) -> (i32, i32) {
    %c0_i32 = arith.constant 0 : i32
    %c0_i32_0 = arith.constant 0 : i32
    %c0_i32_1 = arith.constant 0 : i32
    return %c0_i32, %c0_i32_0 : i32, i32
  }
  func.func @transform_8(%arg0: i32, %arg1: memref<1xi32, #tpu.memory_space<smem>>) -> (i32, i32) {
    %c0_i32 = arith.constant 0 : i32
    %c0_i32_0 = arith.constant 0 : i32
    %c0_i32_1 = arith.constant 0 : i32
    return %c0_i32, %c0_i32_0 : i32, i32
  }
  func.func @transform_9(%arg0: i32, %arg1: memref<1xi32, #tpu.memory_space<smem>>) -> (i32, i32) {
    %c0_i32 = arith.constant 0 : i32
    %c0_i32_0 = arith.constant 0 : i32
    %c0_i32_1 = arith.constant 0 : i32
    return %c0_i32, %c0_i32_0 : i32, i32
  }
  func.func @transform_10(%arg0: i32, %arg1: memref<1xi32, #tpu.memory_space<smem>>) -> (i32, i32) {
    %c0_i32 = arith.constant 0 : i32
    %c0_i32_0 = arith.constant 0 : i32
    return %arg0, %c0_i32 : i32, i32
  }
  func.func @transform_11(%arg0: i32, %arg1: memref<1xi32, #tpu.memory_space<smem>>) -> (i32, i32, i32) {
    %c0_i32 = arith.constant 0 : i32
    %c0_i32_0 = arith.constant 0 : i32
    %c0_i32_1 = arith.constant 0 : i32
    return %c0_i32, %arg0, %c0_i32_0 : i32, i32, i32
  }
}

module attributes {stable_mosaic.version = 11 : i64} {
  func.func @projection_kernel(%arg0: i32, %arg1: i32, %arg2: memref<64x32xbf16, #tpu.memory_space<vmem>>, %arg3: memref<32x512xbf16, #tpu.memory_space<vmem>>, %arg4: memref<1x512xf32, #tpu.memory_space<vmem>>, %arg5: memref<64x512xf32, #tpu.memory_space<vmem>>) attributes {dimension_semantics = [#tpu.dimension_semantics<parallel>, #tpu.dimension_semantics<parallel>], iteration_bounds = array<i64: 1, 1>, scalar_prefetch = 0 : i64, scratch_operands = 0 : i64, tpu.core_type = #tpu.core_type<tc>, window_params = [{transform_indices = @transform_0, window_bounds = array<i64: 64, 32>}, {transform_indices = @transform_1, window_bounds = array<i64: 32, 512>}, {transform_indices = @transform_2, window_bounds = array<i64: 1, 512>}, {transform_indices = @transform_3, window_bounds = array<i64: 64, 512>}]} {
    %c0 = arith.constant 0 : index
    %c0_0 = arith.constant 0 : index
    %0 = vector.load %arg2[%c0, %c0_0] : memref<64x32xbf16, #tpu.memory_space<vmem>>, vector<64x32xbf16>
    %c0_1 = arith.constant 0 : index
    %c0_2 = arith.constant 0 : index
    %1 = vector.load %arg3[%c0_1, %c0_2] : memref<32x512xbf16, #tpu.memory_space<vmem>>, vector<32x512xbf16>
    %cst = arith.constant dense<0.000000e+00> : vector<64x512xf32>
    %2 = tpu.matmul %0, %1, %cst {dimension_numbers = #tpu.dot_dimension_numbers<[1], [0], [0], [1], [0, 0, 1, 1], [], []>} : vector<64x32xbf16>, vector<32x512xbf16>, vector<64x512xf32> -> vector<64x512xf32>
    %c0_3 = arith.constant 0 : index
    %c0_4 = arith.constant 0 : index
    %3 = vector.load %arg4[%c0_3, %c0_4] : memref<1x512xf32, #tpu.memory_space<vmem>>, vector<1x512xf32>
    %4 = vector.broadcast %3 : vector<1x512xf32> to vector<64x512xf32>
    %5 = arith.addf %2, %4 : vector<64x512xf32>
    %c0_5 = arith.constant 0 : index
    %c0_6 = arith.constant 0 : index
    %6 = vector.load %arg5[%c0_5, %c0_6] : memref<64x512xf32, #tpu.memory_space<vmem>>, vector<64x512xf32>
    tpu.vector_store %arg5[%c0_5, %c0_6], %5 {strides = array<i32>} : memref<64x512xf32, #tpu.memory_space<vmem>>, vector<64x512xf32>,
    return
  }
  func.func @transform_0(%arg0: i32, %arg1: i32) -> (i32, i32) {
    %c0_i32 = arith.constant 0 : i32
    %c0_i32_0 = arith.constant 0 : i32
    return %arg1, %c0_i32 : i32, i32
  }
  func.func @transform_1(%arg0: i32, %arg1: i32) -> (i32, i32) {
    %c0_i32 = arith.constant 0 : i32
    %c0_i32_0 = arith.constant 0 : i32
    return %c0_i32, %arg0 : i32, i32
  }
  func.func @transform_2(%arg0: i32, %arg1: i32) -> (i32, i32) {
    %c0_i32 = arith.constant 0 : i32
    %c0_i32_0 = arith.constant 0 : i32
    return %c0_i32, %arg0 : i32, i32
  }
  func.func @transform_3(%arg0: i32, %arg1: i32) -> (i32, i32) {
    %c0_i32 = arith.constant 0 : i32
    return %arg1, %arg0 : i32, i32
  }
}

</mosaic_0001>

<bundles_post_ra>
// kernel: seq2seq_forward.3
= control target key start
LH: loop header
LB: loop body
LE: loop exit
PB: predicated region body
PF: predicated region fallthrough
CT: control target
= control target key end

     0   :  { %v345_v1 = vmov 0   ;;  %vm113_vm0 = vcmask 261120   ;;  %v33_v13 = vlaneseq  ;;  %s549_s1 = inlined_call_operand.vmem [shape: bf16[32,512], index: 1, kind: input, shape index: {}]   ;;  %s550_s0 = inlined_call_operand.vmem [shape: bf16[64,32], index: 0, kind: input, shape index: {}]   ;;  %s551_s2 = inlined_call_operand.vmem [shape: f32[1,512], index: 2, kind: input, shape index: {}]   ;;  %s552_s3 = inlined_call_operand.vmem [shape: f32[64,512], index: 3, kind: output, shape index: {}]  }
   0x1   :  { %v329_v0 = vld [vmem:[%s549_s1 + $0x4] ss:$16 sps:$4 sm:$0xff]   ;;  %158 = vmatprep.mubr.bf16.mxu0 %v345_v1  ;;  %231 = vmatprep.mubr.bf16.mxu1 %v345_v1  ;;  %v331_v2 = vld [vmem:[%s549_s1 + $0xc] ss:$16 sps:$4 sm:$0xff]   ;;  %v333_v3 = vld [vmem:[%s549_s1] ss:$16 sps:$4 sm:$0xff]  }
   0x2   :  { %126 = vmatprep.subr.bf16.mxu0 %v329_v0  ;;  %v334_v4 = vld [vmem:[%s549_s1 + $0x8] ss:$16 sps:$4 sm:$0xff]   ;;  %199 = vmatprep.subr.bf16.mxu1 %v331_v2  ;;  %v335_v5 = vld [vmem:[%s549_s1 + $0x24] ss:$16 sps:$4 sm:$0xff]   ;;  %v337_v6 = vld [vmem:[%s549_s1 + $0x2c] ss:$16 sps:$4 sm:$0xff]  }
   0x3   :  { %127 = vmatpush1.bf16.msra.mxu0 %v333_v3  ;;  %200 = vmatpush1.bf16.msra.mxu1 %v334_v4  ;;  %v339_v7 = vld [vmem:[%s549_s1 + $0x20] ss:$16 sps:$4 sm:$0xff]   ;;  %v340_v8 = vld [vmem:[%s549_s1 + $0x28] ss:$16 sps:$4 sm:$0xff]   ;;  %v34_v14 = vshrl.u32 %v33_v13, 7 }
   0x4   :  { %128 = vmatprep.subr.bf16.mxu0 %v335_v5  ;;  %201 = vmatprep.subr.bf16.mxu1 %v337_v6  ;;  %v341_v9 = vld [vmem:[%s550_s0] sm:$0xff]   ;;  %v342_v10 = vld [vmem:[%s550_s0 + $0x8] sm:$0xff]   ;;  %v343_v11 = vld [vmem:[%s550_s0 + $0x10] sm:$0xff]  }
   0x5   :  { %v344_v12 = vld [vmem:[%s550_s0 + $0x18] sm:$0xff]   ;;  %v35_v15 = vsub.s32 0, %v34_v14  ;;  %v43_v16 = vsub.s32 2, %v34_v14  ;;  %v31_v17 = vld [vmem:[%s551_s2] sm:$0xf]  ;;  %v39_v18 = vsub.s32 1, %v34_v14 }
   0x6   :  { %v47_v19 = vsub.s32 3, %v34_v14 }
   0x7   :  { %129 = vmatpush1.bf16.msra.mxu0 %v339_v7  ;;  %202 = vmatpush1.bf16.msra.mxu1 %v340_v8  ;;  %v413_v20 = vrot.slane %v31_v17, %v35_v15  ;;  %v415_v21 = vrot.slane %v31_v17, %v43_v16  ;;  %v417_v22 = vrot.slane %v31_v17, %v39_v18 }
   0x8   :  { %v419_v23 = vrot.slane %v31_v17, %v47_v19 }
   0xa   :  { %320 = vmatmul.mubr.msk.bf16.vlgmr.msra.gmra.mrb[0].mxu0 %vm113_vm0, %v341_v9  ;;  %324 = vmatmul.mubr.msk.bf16.vlgmr.msra.gmra.mrb[0].mxu1 %vm113_vm0, %v341_v9 }
   0xb   :  { %168 = vmatprep.mubr.bf16.mxu0 %v345_v1  ;;  %241 = vmatprep.mubr.bf16.mxu1 %v345_v1 }
  0x12   :  { %321 = vmatmul.mubr.msk.bf16.gmra.mrb[4].mxu0 %vm113_vm0, %v342_v10  ;;  %325 = vmatmul.mubr.msk.bf16.gmra.mrb[4].mxu1 %vm113_vm0, %v342_v10 }
  0x13   :  { %178 = vmatprep.mubr.bf16.mxu0 %v345_v1  ;;  %251 = vmatprep.mubr.bf16.mxu1 %v345_v1 }
  0x1a   :  { %322 = vmatmul.mubr.msk.bf16.gmra.mrb[8].mxu0 %vm113_vm0, %v343_v11  ;;  %326 = vmatmul.mubr.msk.bf16.gmra.mrb[8].mxu1 %vm113_vm0, %v343_v11 }
  0x1b   :  { %188 = vmatprep.mubr.bf16.mxu0 %v345_v1  ;;  %261 = vmatprep.mubr.bf16.mxu1 %v345_v1 }
  0x22   :  { %323 = vmatmul.mubr.msk.bf16.gmra.mrb[12].mxu0 %vm113_vm0, %v344_v12  ;;  %327 = vmatmul.mubr.msk.bf16.gmra.mrb[12].mxu1 %vm113_vm0, %v344_v12 }
  0xdd   :  { %v160_v24 = vpop.f32.mrb[0].mxu0  ;;  %v233_v25 = vpop.f32.mrb[0].mxu1 }
  0xde   :  { %v161_v26 = vadd.f32 %v160_v24, %v413_v20  ;;  %v234_v27 = vadd.f32 %v233_v25, %v415_v21  ;;  %v162_v28 = vpop.f32.mrb[1].mxu0  ;;  %v235_v29 = vpop.f32.mrb[1].mxu1 }
  0xdf   :  { %v163_v30 = vadd.f32 %v162_v28, %v417_v22  ;;  %v236_v31 = vadd.f32 %v235_v29, %v419_v23  ;;  %v164_v32 = vpop.f32.mrb[2].mxu0  ;;  %v237_v33 = vpop.f32.mrb[2].mxu1 }
  0xe0   :  { %272 = vst [vmem:[%s552_s3] sm:$0xff] %v161_v26  ;;  %274 = vst [vmem:[%s552_s3 + $0x10] sm:$0xff] %v234_v27  ;;  %v165_v34 = vadd.f32 %v164_v32, %v413_v20  ;;  %v238_v35 = vadd.f32 %v237_v33, %v415_v21  ;;  %v166_v36 = vpop.f32.mrb[3].mxu0  ;;  %v239_v37 = vpop.f32.mrb[3].mxu1 }
  0xe1   :  { %273 = vst [vmem:[%s552_s3 + $0x8] sm:$0xff] %v163_v30  ;;  %275 = vst [vmem:[%s552_s3 + $0x18] sm:$0xff] %v236_v31  ;;  %v167_v38 = vadd.f32 %v166_v36, %v417_v22  ;;  %v240_v39 = vadd.f32 %v239_v37, %v419_v23 }
  0xe2   :  { %276 = vst [vmem:[%s552_s3 + $0x20] sm:$0xff] %v165_v34  ;;  %278 = vst [vmem:[%s552_s3 + $0x30] sm:$0xff] %v238_v35 }
  0xe3   :  { %277 = vst [vmem:[%s552_s3 + $0x28] sm:$0xff] %v167_v38  ;;  %279 = vst [vmem:[%s552_s3 + $0x38] sm:$0xff] %v240_v39 }
  0xe5   :  { %v170_v40 = vpop.f32.mrb[4].mxu0  ;;  %v243_v41 = vpop.f32.mrb[4].mxu1 }
  0xe6   :  { %v171_v42 = vadd.f32 %v170_v40, %v413_v20  ;;  %v244_v43 = vadd.f32 %v243_v41, %v415_v21  ;;  %v172_v44 = vpop.f32.mrb[5].mxu0  ;;  %v245_v45 = vpop.f32.mrb[5].mxu1 }
  0xe7   :  { %v173_v46 = vadd.f32 %v172_v44, %v417_v22  ;;  %v246_v47 = vadd.f32 %v245_v45, %v419_v23  ;;  %v174_v48 = vpop.f32.mrb[6].mxu0  ;;  %v247_v49 = vpop.f32.mrb[6].mxu1 }
  0xe8   :  { %280 = vst [vmem:[%s552_s3 + $0x40] sm:$0xff] %v171_v42  ;;  %282 = vst [vmem:[%s552_s3 + $0x50] sm:$0xff] %v244_v43  ;;  %v175_v50 = vadd.f32 %v174_v48, %v413_v20  ;;  %v248_v51 = vadd.f32 %v247_v49, %v415_v21  ;;  %v176_v52 = vpop.f32.mrb[7].mxu0  ;;  %v249_v53 = vpop.f32.mrb[7].mxu1 }
  0xe9   :  { %281 = vst [vmem:[%s552_s3 + $0x48] sm:$0xff] %v173_v46  ;;  %283 = vst [vmem:[%s552_s3 + $0x58] sm:$0xff] %v246_v47  ;;  %v177_v54 = vadd.f32 %v176_v52, %v417_v22  ;;  %v250_v55 = vadd.f32 %v249_v53, %v419_v23 }
  0xea   :  { %284 = vst [vmem:[%s552_s3 + $0x60] sm:$0xff] %v175_v50  ;;  %286 = vst [vmem:[%s552_s3 + $0x70] sm:$0xff] %v248_v51 }
  0xeb   :  { %285 = vst [vmem:[%s552_s3 + $0x68] sm:$0xff] %v177_v54  ;;  %287 = vst [vmem:[%s552_s3 + $0x78] sm:$0xff] %v250_v55 }
  0xed   :  { %v180_v56 = vpop.f32.mrb[8].mxu0  ;;  %v253_v57 = vpop.f32.mrb[8].mxu1 }
  0xee   :  { %v181_v58 = vadd.f32 %v180_v56, %v413_v20  ;;  %v254_v59 = vadd.f32 %v253_v57, %v415_v21  ;;  %v182_v60 = vpop.f32.mrb[9].mxu0  ;;  %v255_v61 = vpop.f32.mrb[9].mxu1 }
  0xef   :  { %v183_v62 = vadd.f32 %v182_v60, %v417_v22  ;;  %v256_v63 = vadd.f32 %v255_v61, %v419_v23  ;;  %v184_v0 = vpop.f32.mrb[10].mxu0  ;;  %v257_v1 = vpop.f32.mrb[10].mxu1 }
  0xf0   :  { %288 = vst [vmem:[%s552_s3 + $0x80] sm:$0xff] %v181_v58  ;;  %290 = vst [vmem:[%s552_s3 + $0x90] sm:$0xff] %v254_v59  ;;  %v185_v2 = vadd.f32 %v184_v0, %v413_v20  ;;  %v258_v3 = vadd.f32 %v257_v1, %v415_v21  ;;  %v186_v4 = vpop.f32.mrb[11].mxu0  ;;  %v259_v5 = vpop.f32.mrb[11].mxu1 }
  0xf1   :  { %289 = vst [vmem:[%s552_s3 + $0x88] sm:$0xff] %v183_v62  ;;  %291 = vst [vmem:[%s552_s3 + $0x98] sm:$0xff] %v256_v63  ;;  %v187_v6 = vadd.f32 %v186_v4, %v417_v22  ;;  %v260_v7 = vadd.f32 %v259_v5, %v419_v23 }
  0xf2   :  { %292 = vst [vmem:[%s552_s3 + $0xa0] sm:$0xff] %v185_v2  ;;  %294 = vst [vmem:[%s552_s3 + $0xb0] sm:$0xff] %v258_v3 }
  0xf3   :  { %293 = vst [vmem:[%s552_s3 + $0xa8] sm:$0xff] %v187_v6  ;;  %295 = vst [vmem:[%s552_s3 + $0xb8] sm:$0xff] %v260_v7 }
  0xf5   :  { %v190_v8 = vpop.f32.mrb[12].mxu0  ;;  %v263_v9 = vpop.f32.mrb[12].mxu1 }
  0xf6   :  { %v191_v10 = vadd.f32 %v190_v8, %v413_v20  ;;  %v264_v11 = vadd.f32 %v263_v9, %v415_v21  ;;  %v192_v12 = vpop.f32.mrb[13].mxu0  ;;  %v265_v13 = vpop.f32.mrb[13].mxu1 }
  0xf7   :  { %v193_v14 = vadd.f32 %v192_v12, %v417_v22  ;;  %v266_v15 = vadd.f32 %v265_v13, %v419_v23  ;;  %v194_v16 = vpop.f32.mrb[14].mxu0  ;;  %v267_v17 = vpop.f32.mrb[14].mxu1 }
  0xf8   :  { %296 = vst [vmem:[%s552_s3 + $0xc0] sm:$0xff] %v191_v10  ;;  %298 = vst [vmem:[%s552_s3 + $0xd0] sm:$0xff] %v264_v11  ;;  %v195_v18 = vadd.f32 %v194_v16, %v413_v20  ;;  %v268_v19 = vadd.f32 %v267_v17, %v415_v21  ;;  %v196_v24 = vpop.f32.mrb[15].mxu0  ;;  %v269_v25 = vpop.f32.mrb[15].mxu1 }
  0xf9   :  { %297 = vst [vmem:[%s552_s3 + $0xc8] sm:$0xff] %v193_v14  ;;  %299 = vst [vmem:[%s552_s3 + $0xd8] sm:$0xff] %v266_v15  ;;  %v197_v26 = vadd.f32 %v196_v24, %v417_v22  ;;  %v270_v27 = vadd.f32 %v269_v25, %v419_v23 }
  0xfa   :  { %300 = vst [vmem:[%s552_s3 + $0xe0] sm:$0xff] %v195_v18  ;;  %302 = vst [vmem:[%s552_s3 + $0xf0] sm:$0xff] %v268_v19 }
  0xfb   :  { %301 = vst [vmem:[%s552_s3 + $0xe8] sm:$0xff] %v197_v26  ;;  %303 = vst [vmem:[%s552_s3 + $0xf8] sm:$0xff] %v270_v27 }

// kernel: seq2seq_forward.2
= control target key start
LH: loop header
LB: loop body
LE: loop exit
PB: predicated region body
PF: predicated region fallthrough
CT: control target
= control target key end

     0   :  { %vm85_vm0 = vcmask 130048   ;;  %v1098_v27 = vmov 0.0   ;;  %s1254_s0 = inlined_call_operand.<no memory space> [shape: s32[1], index: 0, kind: input, shape index: {}]   ;;  %s1255_s1 = inlined_call_operand.vmem [shape: s32[8,1], index: 1, kind: input, shape index: {}]   ;;  %s1256_s3 = inlined_call_operand.vmem [shape: bf16[8,8,16], index: 3, kind: input, shape index: {}]   ;;  %s1257_s4 = inlined_call_operand.vmem [shape: bf16[16,128], index: 4, kind: input, shape index: {}]   ;;  %s1258_s5 = inlined_call_operand.vmem [shape: bf16[32,128], index: 5, kind: input, shape index: {}]   ;;  %s1259_s7 = inlined_call_operand.vmem [shape: bf16[16,128], index: 7, kind: input, shape index: {}]   ;;  %s1260_s8 = inlined_call_operand.vmem [shape: bf16[32,128], index: 8, kind: input, shape index: {}]   ;;  %s1261_s9 = inlined_call_operand.vmem [shape: bf16[32,128], index: 9, kind: input, shape index: {}]   ;;  %s1262_s10 = inlined_call_operand.vmem [shape: f32[1,128], index: 10, kind: input, shape index: {}]   ;;  %s1263_s11 = inlined_call_operand.vmem [shape: f32[8,32], index: 11, kind: output, shape index: {0}]   ;;  %s1264_s12 = inlined_call_operand.vmem [shape: bf16[8,8,32], index: 12, kind: output, shape index: {1}]   ;;  %s1265_s2 = inlined_call_operand.vmem [shape: bf16[8,8,16], index: 2, kind: input, shape index: {}]   ;;  %s1266_s6 = inlined_call_operand.vmem [shape: f32[1,128], index: 6, kind: input, shape index: {}]  }
   0x1   :  { %v1071_v0 = vld [vmem:[%s1255_s1] sm:$0xff]  ;;  %v897_v3 = vld [vmem:[%s1265_s2 + $0x10] sm:$0xff]   ;;  %v898_v4 = vld [vmem:[%s1265_s2 + $0x8] sm:$0xff]   ;;  %p686_p0 = scmp.le.s32.totalorder %s1254_s0, 0 }
   0x2   :  { %v895_v1 = vld [vmem:[%s1257_s4] sm:$0xff]   ;;  %785 = vmatprep.mubr.msk.bf16.mxu1 %vm85_vm0, %v897_v3  ;;  %v899_v5 = vld [vmem:[%s1265_s2 + $0x18] sm:$0xff]   ;;  %v1104_v28 = vmov (!%p686_p0), 0.0   ;;  %v1106_v29 = vmov (!%p686_p0), 0.0   ;;  %s1108_s17 = smov (!%p686_p0), 0  }
   0x3   :  { %v896_v2 = vld [vmem:[%s1265_s2] sm:$0xff]   ;;  %779 = vmatprep.subr.bf16.mxu0 %v895_v1  ;;  %823 = vmatprep.subr.bf16.mxu1 %v895_v1 }
   0x4   :  { %780 = vmatpush3.bf16.msra.mxu0 %v895_v1  ;;  %824 = vmatpush3.bf16.msra.mxu1 %v895_v1  ;;  %v676_v7 = vld [vmem:[%s1266_s6] ss:$0 sm:$0xff] }
   0x5   :  { %781 = vmatprep.mubr.msk.bf16.mxu0 %vm85_vm0, %v896_v2 }
   0x7   :  { %782 = vmatmul.mubr.msk.bf16.vlgmr.msra.gmra.mrb[0].mxu0 %vm85_vm0, %v898_v4  ;;  %786 = vmatmul.mubr.msk.bf16.vlgmr.msra.gmra.mrb[0].mxu1 %vm85_vm0, %v899_v5 }
  0xda   :  { %v783_v6 = vpop.f32.mrb[0].mxu0  ;;  %v787_v8 = vpop.f32.mrb[0].mxu1 }
  0xdb   :  { %v132_v9 = vpop.f32.mrb[1].mxu0  ;;  %v148_v10 = vpop.f32.mrb[1].mxu1  ;;  %v141_v13 = vadd.f32 %v783_v6, %v676_v7  ;;  %v157_v14 = vadd.f32 %v787_v8, %v676_v7 }
  0xdc   :  { %v784_v11 = vpop.f32.mrb[2].mxu0  ;;  %v788_v12 = vpop.f32.mrb[2].mxu1  ;;  %v133_v19 = vadd.f32 %v676_v7, %v132_v9  ;;  %v149_v20 = vadd.f32 %v676_v7, %v148_v10  ;;  %658 = sbr.rel (%p686_p0) target bundleno = 933 (0x3a5), region = 79 }
  0xdd   :  { %v144_v15 = vadd.f32 %v784_v11, %v676_v7  ;;  %v160_v16 = vadd.f32 %v788_v12, %v676_v7  ;;  %v135_v17 = vpop.f32.mrb[3].mxu0  ;;  %v151_v18 = vpop.f32.mrb[3].mxu1 }
  0xde   :  { %v136_v21 = vadd.f32 %v676_v7, %v135_v17  ;;  %v152_v22 = vadd.f32 %v676_v7, %v151_v18 }
  0xdf   :  { %v722_v23 = vpack.c.bf16 %v144_v15, %v141_v13  ;;  %v732_v24 = vpack.c.bf16 %v160_v16, %v157_v14 }
  0xe0   :  { %v717_v25 = vpack.c.bf16 %v136_v21, %v133_v19  ;;  %v727_v26 = vpack.c.bf16 %v152_v22, %v149_v20 }
  0xe1   :  { %754 = vst [vmem:[#allocation2 + $0x8] sm:$0xff] %v722_v23   ;;  %756 = vst [vmem:[#allocation2 + $0x18] sm:$0xff] %v732_v24  }
  0xe2   :  { %718 = vst [vmem:[#allocation2] sm:$0xff] %v717_v25   ;;  %755 = vst [vmem:[#allocation2 + $0x10] sm:$0xff] %v727_v26  }
  0xe3 LB: > { %v989_v30 = vmov 0.0   ;;  %v902_v31 = vld [vmem:[%s1258_s5] sm:$0xff]   ;;  %v191_v32 = vpack.c.bf16 %v967_v29, %v967_v29  ;;  %vm990_vm1 = vmmov 0   ;;  %v903_v33 = vld [vmem:[%s1258_s5 + $0x8] sm:$0xff]   ;;  %s991_s22 = smov 32   ;;  %vm211_vm2 = vcmask 261120   ;;  %s971_s17 = sphi %s1108_s17, %s182_s17   ;;  %v967_v29 = vphi %v1106_v29, %v1267_v29   ;;  %v963_v28 = vphi %v1104_v28, %v288_v28  }
  0xe4   : > { %789 = vmatprep.subr.bf16.mxu0 %v989_v30  ;;  %793 = vmatprep.mubr.msk.bf16.mxu0 %vm990_vm1, %v989_v30  ;;  %s687_s23 = sshll.u32 %s971_s17, 2  ;;  %v992_v42 = vmov 0   ;;  %s993_s25 = smov 64   ;;  %v280_v47 = vstv %s971_s17 }
  0xe5   : > { %790 = vmatpush3.bf16.msra.mxu0 %v902_v31  ;;  %197 = vrot.lane.b32.xlu0 %v191_v32, %s991_s22  ;;  %s188_s24 = scalar_lea.vmem [#allocation2], %s687_s23  ;;  %vm281_vm3 = vcmp.lt.s32.totalorder %v280_v47, %v1071_v0  ;;  %s182_s17 = sadd.s32 1, %s971_s17  }
  0xe6   : > { %791 = vmatprep.subr.bf16.mxu0 %v989_v30  ;;  %900 = vset.pattern.permute.xlu1 %v992_v42  ;;  %v282_v51 = vsel %vm281_vm3, 1, %v992_v42  ;;  %p181_p1 = scmp.ge.s32.totalorder %s182_s17, %s1254_s0 }
  0xe7   : > { %901 = vset.pattern.permute.xlu0 %v992_v42 }
  0xe9   : > { %792 = vmatpush3.bf16.msra.mxu0 %v903_v33  ;;  %v189_v35 = vld [vmem:[%s188_s24] sm:$0xf] }
  0xea   : > { %v190_v36 = vunpack.c.l.bf16 %v189_v35 }
 0x157   : > { %v198_v34 = vpop.permute.xlu0 %197 }
 0x158   : > { %794 = vmatmul.mubr.msk.bf16.vlgmr.msra.gmra.mrb[0].mxu0 %vm211_vm2, %v198_v34 }
 0x22b   : > { %v249_v37 = vpop.f32.mrb[0].mxu0 }
 0x22c   : > { %v255_v38 = vadd.f32 %v249_v37, %v190_v36  ;;  %v795_v39 = vpop.f32.mrb[1].mxu0 }
 0x22d   : > { %v252_v40 = vpop.f32.mrb[2].mxu0 }
 0x22e   : > { %904 = vtanh.f32 %v255_v38  ;;  %v796_v41 = vpop.f32.mrb[3].mxu0  ;;  %v691_v44 = vmul.f32 -1.442695, %v255_v38 }
 0x230   : > { %906 = vpow2.f32 %v691_v44 }
 0x238   : > { %v905_v43 = vpop.eup %904 }
 0x239   : > { %265 = vrot.lane.b32.xlu0 %v905_v43, %s993_s25 }
 0x23a   : > { %v907_v45 = vpop.eup %906 }
 0x23b   : > { %v259_v46 = vadd.f32 1.0, %v907_v45 }
 0x23d   : > { %908 = vrcp.f32 %v259_v46 }
 0x247   : > { %v909_v48 = vpop.eup %908 }
 0x248   : > { %v263_v52 = vmul.f32 %v963_v28, %v909_v48 }
 0x2ab   : > { %v266_v49 = vpop.permute.xlu0 %265 }
 0x2ac   : > { %v268_v50 = vmul.f32 %v909_v48, %v266_v49 }
 0x2ae   : > { %270 = vrot.lane.b32.xlu1 %v268_v50, %s991_s22 }
 0x2b2   : > { %284 = vperm.xlu1 %900, %v282_v51  }
 0x320   : > { %v271_v53 = vpop.permute.xlu1 %270 }
 0x321   : > { %v273_v54 = vadd.f32 %v271_v53, %v263_v52 }
 0x323   : > { %910 = vtanh.f32 %v273_v54 }
 0x32d   : > { %v911_v55 = vpop.eup %910 }
 0x32e   : > { %276 = vrot.lane.b32.xlu0 %v911_v55, %s993_s25 }
 0x331   : > { %v285_v56 = vpop.permute.xlu1 %284 }
 0x332   : > { %vm286_vm4 = vcmp.eq.s32.totalorder %v285_v56, 1 }
 0x333   : > { %v288_v28 = vsel %vm286_vm4, %v273_v54, %v963_v28  }
 0x39e   :  { %184 = sbr.rel (!%p181_p1) target bundleno = 227 (0xe3), region = 85 }
 0x3a0   : > { %v277_v57 = vpop.permute.xlu0 %276 }
 0x3a1   : > { %v279_v58 = vmul.f32 %v909_v48, %v277_v57 }
 0x3a3   : > { %v287_v59 = vsel %vm286_vm4, %v279_v58, %v967_v29  }
 0x3a4   : > { %v1267_v29 = vmov %v287_v59  ;;  %v1268_v27 = vmov (%p181_p1), %v287_v59 }
 0x3a5 PF:  { %v289_v60 = vmul.f32 %v975_v27, %v975_v27  ;;  %s994_s28 = smov 32   ;;  %vm294_vm5 = vcmask 261120   ;;  %v912_v63 = vld [vmem:[%s1259_s7] sm:$0xff]   ;;  %v995_v2 = vmov 0.0   ;;  %vm996_vm6 = vmmov 0   ;;  %v914_v4 = vld [vmem:[%s1256_s3 + $0x8] sm:$0xff]   ;;  %v975_v27 = vphi %v1098_v27, %v1268_v27  }
 0x3a6   :  { %v913_v1 = vld [vmem:[%s1256_s3] sm:$0xff]   ;;  %797 = vmatprep.subr.bf16.mxu0 %v995_v2  ;;  %801 = vmatprep.mubr.msk.bf16.mxu0 %vm996_vm6, %v995_v2  ;;  %v916_v5 = vld [vmem:[%s1256_s3 + $0x10] sm:$0xff]   ;;  %v918_v6 = vld [vmem:[%s1260_s8 + $0x8] sm:$0xff]   ;;  %vm513_vm7 = vcmask 257024   ;;  %v997_v23 = vmov 0   ;;  %v1212_v42 = vmov (!%p686_p0), 0.0  }
 0x3a7   :  { %291 = vrot.lane.b32.xlu0 %v289_v60, %s994_s28  ;;  %v915_v3 = vld [vmem:[%s1260_s8] sm:$0xff]   ;;  %805 = vmatprep.subr.bf16.mxu1 %v912_v63  ;;  %v917_v7 = vld [vmem:[%s1256_s3 + $0x18] sm:$0xff]   ;;  %514 = vst.msk [vmem:[%s1264_s12] sm:$0xf] %vm513_vm7, %v997_v23  ;;  %v1214_v43 = vmov (!%p686_p0), 0.0   ;;  %s1216_s7 = smov (!%p686_p0), 0  }
 0x3a8   :  { %807 = vmatprep.mubr.msk.bf16.mxu1 %vm85_vm0, %v913_v1  ;;  %806 = vmatpush3.bf16.msra.mxu1 %v912_v63  ;;  %515 = vst.msk [vmem:[%s1264_s12 + $0x4] sm:$0xf] %vm513_vm7, %v997_v23  ;;  %516 = vst.msk [vmem:[%s1264_s12 + $0x8] sm:$0xf] %vm513_vm7, %v997_v23  ;;  %v692_v24 = vld [vmem:[%s1262_s10] ss:$0 sm:$0xff] }
 0x3a9   :  { %798 = vmatpush3.bf16.msra.mxu0 %v915_v3  ;;  %517 = vst.msk [vmem:[%s1264_s12 + $0xc] sm:$0xf] %vm513_vm7, %v997_v23  ;;  %518 = vst.msk [vmem:[%s1264_s12 + $0x10] sm:$0xf] %vm513_vm7, %v997_v23 }
 0x3aa   :  { %799 = vmatprep.subr.bf16.mxu0 %v995_v2  ;;  %519 = vst.msk [vmem:[%s1264_s12 + $0x14] sm:$0xf] %vm513_vm7, %v997_v23  ;;  %520 = vst.msk [vmem:[%s1264_s12 + $0x18] sm:$0xf] %vm513_vm7, %v997_v23 }
 0x3ab   :  { %808 = vmatmul.mubr.msk.bf16.vlgmr.msra.gmra.mrb[0].mxu1 %vm85_vm0, %v914_v4  ;;  %521 = vst.msk [vmem:[%s1264_s12 + $0x1c] sm:$0xf] %vm513_vm7, %v997_v23 }
 0x3ac   :  { %811 = vmatprep.mubr.msk.bf16.mxu1 %vm85_vm0, %v916_v5 }
 0x3ad   :  { %800 = vmatpush3.bf16.msra.mxu0 %v918_v6 }
 0x3b3   :  { %812 = vmatmul.mubr.msk.bf16.gmra.mrb[4].mxu1 %vm85_vm0, %v917_v7 }
 0x419   :  { %v292_v61 = vpop.permute.xlu0 %291 }
 0x41a   :  { %v295_v62 = vsel %vm294_vm5, %v292_v61, 0.0 }
 0x41b   :  { %296 = vadd.xlane.f32.xlu0 %v295_v62 }
 0x47e   :  { %v809_v13 = vpop.f32.mrb[0].mxu1 }
 0x47f   :  { %v458_v14 = vpop.f32.mrb[1].mxu1 }
 0x480   :  { %v810_v15 = vpop.f32.mrb[2].mxu1 }
 0x481   :  { %v461_v16 = vpop.f32.mrb[3].mxu1 }
 0x486   :  { %v813_v17 = vpop.f32.mrb[4].mxu1 }
 0x487   :  { %v474_v18 = vpop.f32.mrb[5].mxu1 }
 0x488   :  { %v814_v19 = vpop.f32.mrb[6].mxu1 }
 0x489   :  { %v477_v20 = vpop.f32.mrb[7].mxu1 }
 0x4a8   :  { %v297_v8 = vpop.xlane.xlu0 %296 }
 0x4a9   :  { %v298_v9 = vmax.f32 %v297_v8, 1e-12 }
 0x4ab   :  { %919 = vrsqrt.f32 %v298_v9 }
 0x4b5   :  { %v920_v10 = vpop.eup %919 }
 0x4b6   :  { %v300_v11 = vmul.f32 %v975_v27, %v920_v10 }
 0x4b8   :  { %v306_v12 = vpack.c.bf16 %v300_v11, %v300_v11 }
 0x4ba   :  { %319 = vrot.lane.b32.xlu1 %v306_v12, %s994_s28 }
 0x4be   :  { %302 = vrot.lane.b32.xlu1 %v300_v11, %s994_s28 }
 0x52c   :  { %v320_v21 = vpop.permute.xlu1 %319 }
 0x52d   :  { %802 = vmatmul.mubr.msk.bf16.vlgmr.msra.gmra.mrb[0].mxu0 %vm294_vm5, %v320_v21 }
 0x530   :  { %v303_v22 = vpop.permute.xlu1 %302 }
 0x531   :  { %305 = vst.msk [vmem:[%s1263_s11] sm:$0xff] %vm294_vm5, %v303_v22 }
 0x600   :  { %v370_v25 = vpop.f32.mrb[0].mxu0 }
 0x601   :  { %v371_v26 = vadd.f32 %v692_v24, %v370_v25  ;;  %v803_v27 = vpop.f32.mrb[1].mxu0 }
 0x602   :  { %v373_v28 = vpop.f32.mrb[2].mxu0  ;;  %669 = sbr.rel (%p686_p0) target bundleno = 2368 (0x940), region = 90 }
 0x603   :  { %v489_v29 = vadd.f32 %v458_v14, %v371_v26  ;;  %v490_v30 = vadd.f32 %v461_v16, %v371_v26  ;;  %v491_v31 = vadd.f32 %v809_v13, %v371_v26  ;;  %v492_v32 = vadd.f32 %v810_v15, %v371_v26  ;;  %v804_v33 = vpop.f32.mrb[3].mxu0 }
 0x604   :  { %v493_v34 = vadd.f32 %v474_v18, %v371_v26  ;;  %v494_v35 = vadd.f32 %v477_v20, %v371_v26  ;;  %v495_v36 = vadd.f32 %v813_v17, %v371_v26  ;;  %v496_v37 = vadd.f32 %v814_v19, %v371_v26 }
 0x605   :  { %v737_v38 = vpack.c.bf16 %v490_v30, %v489_v29  ;;  %v742_v39 = vpack.c.bf16 %v492_v32, %v491_v31 }
 0x606   :  { %v747_v40 = vpack.c.bf16 %v494_v35, %v493_v34  ;;  %v752_v41 = vpack.c.bf16 %v496_v37, %v495_v36 }
 0x607   :  { %738 = vst [vmem:[#allocation2] sm:$0xff] %v737_v38   ;;  %757 = vst [vmem:[#allocation2 + $0x8] sm:$0xff] %v742_v39  }
 0x608   :  { %758 = vst [vmem:[#allocation2 + $0x10] sm:$0xff] %v747_v40   ;;  %759 = vst [vmem:[#allocation2 + $0x18] sm:$0xff] %v752_v41  }
 0x609 LB: > { %v998_v44 = vmov 0.0   ;;  %v923_v45 = vld [vmem:[%s1261_s9] sm:$0xff]   ;;  %v534_v46 = vpack.c.bf16 %v983_v43, %v983_v43  ;;  %vm999_vm8 = vmmov 0   ;;  %v924_v47 = vld [vmem:[%s1261_s9 + $0x8] sm:$0xff]   ;;  %s1000_s18 = smov 32   ;;  %s706_s3 = sshll.u32 %s987_s7, 2  ;;  %v622_v61 = vstv %s987_s7  ;;  %s987_s7 = sphi %s1216_s7, %s525_s7   ;;  %v983_v43 = vphi %v1214_v43, %v621_v43   ;;  %v979_v42 = vphi %v1212_v42, %v615_v42  }
 0x60a   : > { %815 = vmatprep.subr.bf16.mxu0 %v998_v44  ;;  %819 = vmatprep.mubr.msk.bf16.mxu0 %vm999_vm8, %v998_v44  ;;  %s531_s8 = scalar_lea.vmem [#allocation2], %s706_s3  ;;  %s1001_s19 = smov 64   ;;  %v1002_v60 = vmov 0   ;;  %vm623_vm9 = vcmp.lt.s32.totalorder %v622_v61, %v1071_v0 }
 0x60b   : > { %816 = vmatpush3.bf16.msra.mxu0 %v923_v45  ;;  %540 = vrot.lane.b32.xlu0 %v534_v46, %s1000_s18  ;;  %v624_v2 = vsel %vm623_vm9, 1, %v1002_v60  ;;  %s638_s22 = scalar_lea.vmem %s1264_s12, %s706_s3  ;;  %s525_s7 = sadd.s32 1, %s987_s7  }
 0x60c   : > { %817 = vmatprep.subr.bf16.mxu0 %v998_v44  ;;  %921 = vset.pattern.permute.xlu1 %v1002_v60  ;;  %p524_p2 = scmp.ge.s32.totalorder %s525_s7, %s1254_s0 }
 0x60d   : > { %922 = vset.pattern.permute.xlu0 %v1002_v60 }
 0x60f   : > { %818 = vmatpush3.bf16.msra.mxu0 %v924_v47  ;;  %v532_v49 = vld [vmem:[%s531_s8] sm:$0xf] }
 0x610   : > { %v533_v50 = vunpack.c.l.bf16 %v532_v49 }
 0x67d   : > { %v541_v48 = vpop.permute.xlu0 %540 }
 0x67e   : > { %820 = vmatmul.mubr.msk.bf16.vlgmr.msra.gmra.mrb[0].mxu0 %vm294_vm5, %v541_v48 }
 0x751   : > { %v591_v51 = vpop.f32.mrb[0].mxu0 }
 0x752   : > { %v597_v52 = vadd.f32 %v591_v51, %v533_v50  ;;  %v821_v53 = vpop.f32.mrb[1].mxu0 }
 0x753   : > { %v594_v54 = vpop.f32.mrb[2].mxu0 }
 0x754   : > { %925 = vtanh.f32 %v597_v52  ;;  %v822_v55 = vpop.f32.mrb[3].mxu0  ;;  %v710_v57 = vmul.f32 -1.442695, %v597_v52 }
 0x756   : > { %927 = vpow2.f32 %v710_v57 }
 0x75e   : > { %v926_v56 = vpop.eup %925 }
 0x75f   : > { %607 = vrot.lane.b32.xlu0 %v926_v56, %s1001_s19 }
 0x760   : > { %v928_v58 = vpop.eup %927 }
 0x761   : > { %v601_v59 = vadd.f32 1.0, %v928_v58 }
 0x763   : > { %929 = vrcp.f32 %v601_v59 }
 0x76d   : > { %v930_v62 = vpop.eup %929 }
 0x76e   : > { %v605_v3 = vmul.f32 %v979_v42, %v930_v62 }
 0x7d1   : > { %v608_v63 = vpop.permute.xlu0 %607 }
 0x7d2   : > { %v610_v1 = vmul.f32 %v930_v62, %v608_v63 }
 0x7d4   : > { %612 = vrot.lane.b32.xlu1 %v610_v1, %s1000_s18 }
 0x7d8   : > { %626 = vperm.xlu1 %921, %v624_v2  }
 0x846   : > { %v613_v4 = vpop.permute.xlu1 %612 }
 0x847   : > { %v615_v42 = vadd.f32 %v613_v4, %v605_v3  }
 0x849   : > { %931 = vtanh.f32 %v615_v42 }
 0x853   : > { %v932_v5 = vpop.eup %931 }
 0x854   : > { %618 = vrot.lane.b32.xlu0 %v932_v5, %s1001_s19 }
 0x857   : > { %v627_v6 = vpop.permute.xlu1 %626 }
 0x858   : > { %vm628_vm10 = vcmp.eq.s32.totalorder %v627_v6, 1 }
 0x8c6   : > { %v619_v7 = vpop.permute.xlu0 %618 }
 0x8c7   : > { %v621_v43 = vmul.f32 %v930_v62, %v619_v7  }
 0x8c9   : > { %v629_v8 = vsel %vm628_vm10, %v621_v43, 0.0 }
 0x8ca   : > { %v713_v9 = vpack.c.bf16 %v629_v8, %v629_v8 }
 0x8cc   : > { %634 = vrot.lane.b32.xlu1 %v713_v9, %s1000_s18 }
 0x939   :  { %527 = sbr.rel (!%p524_p2) target bundleno = 1545 (0x609), region = 96 }
 0x93e   : > { %v635_v10 = vpop.permute.xlu1 %634 }
 0x93f   : > { %639 = vst.msk [vmem:[%s638_s22] sm:$0xf] %vm513_vm7, %v635_v10 }
 0x940 PF:  {}

</bundles_post_ra>
